<compile_context>
chip_gen: v7x
topology: tpu7x:2x2x1
jax: 0.10.0
libtpu: 0.0.40
codegen_flags: <defaults>
</compile_context>

<pallas_src>
import functools
import math

import jax
import jax.numpy as jnp
from jax.experimental import pallas as pl
from jax.experimental.pallas import tpu as pltpu

LRELU_SLOPE = 0.1


def _round_up(x, m):
    return ((x + m - 1) // m) * m


# ---------------------------------------------------------------------------
# Pallas kernel: one (group-chunk, batch, time-tile) grid step
# ---------------------------------------------------------------------------
def _conv_taps_kernel(x_ref, w_ref, b_ref, o_ref, *, fold, n_taps, lrelu_slope):
    """Shapes seen per grid step:
      x_ref : (1, 1, ci_chunk, T_tile + halo)   folded polyphase input (bf16)
      w_ref : (1, n_taps, co_chunk, ci_chunk)   all taps, VMEM-resident (bf16)
      b_ref : (co_chunk, 1)                     bias (f32)
      o_ref : (1, co_chunk, T_tile)             output tile (f32)
    """
    co = o_ref.shape[1]
    tt = o_ref.shape[2]
    acc = jnp.zeros((co, tt), jnp.float32)
    # Static unroll over folded taps: one MXU matmul per tap, a single local
    # accumulator (no per-tap read-modify-write of the output block).
    for kq in range(n_taps):
        x_blk = x_ref[0, 0, :, kq * fold: kq * fold + tt]   # (ci_chunk, tt)
        w_blk = w_ref[0, kq]                                # (co_chunk, ci_chunk)
        acc = acc + jnp.dot(w_blk, x_blk, preferred_element_type=jnp.float32)
    y = acc + b_ref[...]
    if lrelu_slope is not None:
        y = jnp.where(y >= 0.0, y, lrelu_slope * y)
    o_ref[0] = y.astype(o_ref.dtype)


# ---------------------------------------------------------------------------
# Wrapper: strided grouped Conv1d (NCW) + bias + optional LeakyReLU
# ---------------------------------------------------------------------------
def conv1d_pallas(x, w_grouped, bias, *, stride, padding, groups=1,
                  lrelu_slope=None, compute_dtype=jnp.bfloat16,
                  time_tile=None, mxu_rows=128):
    """x: (B, C_in, T) f32; w_grouped: (C_out, C_in/groups, K) f32; bias: (C_out,)."""
    batch, c_in, t_in = x.shape
    c_out, c_in_g_w, k_size = w_grouped.shape
    s = int(stride)
    g = int(groups)
    assert c_in % g == 0 and c_out % g == 0
    c_in_g = c_in // g
    c_out_g = c_out // g
    assert c_in_g_w == c_in_g, (c_in_g_w, c_in_g)

    t_out = (t_in + 2 * padding - k_size) // s + 1
    assert t_out >= 1, "input too short for this conv"

    n_kq = -(-k_size // s)                       # polyphase taps (per phase)

    # --- MXU-fill planning: group-pack factor P and tap-fold factor F --------
    def _fold_for(p):
        base = max(1, p * c_in_g * s)
        return max(1, min(n_kq, -(-mxu_rows // base)))

    p_pack = g                                   # pack P groups per matmul
    for d in range(1, g + 1):
        if g % d == 0 and d * c_out_g >= mxu_rows:
            p_pack = d
            break
    fold = _fold_for(p_pack)
    if g // p_pack > 1:
        if ((p_pack * c_out_g) % 8) or ((p_pack * c_in_g * fold * s) % 8):
            p_pack = g                           # keep (8,128) tiling legal
            fold = _fold_for(p_pack)
    n_chunks = g // p_pack
    co_chunk = p_pack * c_out_g
    ci_chunk = p_pack * c_in_g * fold * s        # contraction dim per matmul

    n_taps = -(-n_kq // fold)                    # taps after folding
    k_pad = n_taps * fold * s                    # zero-padded kernel length
    assert k_pad >= k_size

    # --- time tiling: lane-dense output (multiple of 128) --------------------
    t_pad = _round_up(t_out, 128)
    if time_tile is None:
        if t_pad <= 1024:
            tt = t_pad
        else:
            d_best = 1
            for d in range(1, t_pad // 128 + 1):
                if (t_pad // 128) % d == 0 and 128 * d <= 1024:
                    d_best = d
            tt = 128 * d_best
    else:
        assert time_tile % 128 == 0
        tt = int(time_tile)
        t_pad = _round_up(t_out, tt)
    n_tiles = t_pad // tt
    halo = (n_taps - 1) * fold
    m_glob = t_pad + halo
    total = s * (m_glob + fold - 1)
    right_pad = total - padding - t_in
    assert right_pad >= 0, "padding bookkeeping error"

    # --- wrapper-side layout (pure XLA copies at HBM roofline) ----------------
    xq = x.astype(compute_dtype)                 # bf16 operands, f32 accumulate
    x_pad = jnp.pad(xq, ((0, 0), (0, 0), (padding, right_pad)))
    x_r = x_pad.reshape(batch, c_in, m_glob + fold - 1, s)
    x_f = jnp.stack([x_r[:, :, f:f + m_glob, :] for f in range(fold)], axis=2)
    # contraction row order = (channel, fold, phase)  -> groups stay contiguous
    x_f = x_f.transpose(0, 1, 2, 4, 3).reshape(batch, c_in * fold * s, m_glob)
    x_tiles = jnp.stack(
        [x_f[:, :, t0 * tt: t0 * tt + tt + halo] for t0 in range(n_tiles)],
        axis=1)                                  # (B, n_tiles, C_contr, tt+halo)

    wq = w_grouped.astype(compute_dtype)
    w_pad = jnp.pad(wq, ((0, 0), (0, 0), (0, k_pad - k_size)))
    w_r = w_pad.reshape(g, c_out_g, c_in_g, n_taps, fold, s)
    w_r = w_r.transpose(3, 0, 1, 2, 4, 5)        # (taps, G, co_g, ci_g, F, s)
    w_r = w_r.reshape(n_taps, n_chunks, p_pack, c_out_g, c_in_g * fold * s)
    eye_p = jnp.eye(p_pack, dtype=compute_dtype)
    w_bd = w_r[:, :, :, :, None, :] * eye_p[None, None, :, None, :, None]
    w_chunks = w_bd.reshape(n_taps, n_chunks, co_chunk, ci_chunk)
    w_chunks = w_chunks.transpose(1, 0, 2, 3)    # (chunks, taps, co_c, ci_c)

    b_col = bias.reshape(c_out, 1).astype(jnp.float32)

    kernel = functools.partial(_conv_taps_kernel, fold=fold, n_taps=n_taps,
                               lrelu_slope=lrelu_slope)

    # VMEM budget derived from actual block sizes (double-buffered), <= 48 MiB.
    cbytes = jnp.dtype(compute_dtype).itemsize
    per_step = (ci_chunk * (tt + halo) * cbytes
                + n_taps * co_chunk * ci_chunk * cbytes
                + co_chunk * tt * 4
                + co_chunk * 128 * 4)
    vmem_limit = int(min(48 * 2 ** 20, max(16 * 2 ** 20, 4 * per_step)))

    out = pl.pallas_call(
        kernel,
        out_shape=jax.ShapeDtypeStruct((batch, c_out, t_pad), jnp.float32),
        grid=(n_chunks, batch, n_tiles),
        in_specs=[
            pl.BlockSpec((1, 1, ci_chunk, tt + halo),
                         lambda gc, b, t0: (b, t0, gc, 0)),
            # constant over (batch, time-tile): weights stay VMEM-resident
            pl.BlockSpec((1, n_taps, co_chunk, ci_chunk),
                         lambda gc, b, t0: (gc, 0, 0, 0)),
            pl.BlockSpec((co_chunk, 1), lambda gc, b, t0: (gc, 0)),
        ],
        out_specs=pl.BlockSpec((1, co_chunk, tt),
                               lambda gc, b, t0: (b, gc, t0)),
        compiler_params=pltpu.CompilerParams(
            dimension_semantics=("parallel", "parallel", "parallel"),
            vmem_limit_bytes=vmem_limit,
        ),
    )(x_tiles, w_chunks, b_col)
    return out[:, :, :t_out]


def avg_pool1d_pallas(x, kernel_size=4, stride=2, padding=2,
                      compute_dtype=jnp.bfloat16):
    """AvgPool1d(kernel, stride, padding), count_include_pad=True (PyTorch
    default), expressed as a depthwise conv through the same Pallas kernel."""
    c = x.shape[1]
    w = jnp.full((c, 1, kernel_size), 1.0 / kernel_size, jnp.float32)
    b = jnp.zeros((c,), jnp.float32)
    return conv1d_pallas(x, w, b, stride=stride, padding=padding, groups=c,
                         lrelu_slope=None, compute_dtype=compute_dtype)


# ---------------------------------------------------------------------------
# Module structure (DiscriminatorS / MultiScaleDiscriminator)
# ---------------------------------------------------------------------------
def _disc_s_configs(hidden):
    # (c_in, c_out, kernel, stride, groups, padding); last entry is conv_post.
    return [
        (1,          hidden,      15, 1, 1,  7),
        (hidden,     hidden,      41, 2, 4,  20),
        (hidden,     hidden * 2,  41, 2, 16, 20),
        (hidden * 2, hidden * 4,  41, 4, 16, 20),
        (hidden * 4, hidden * 8,  41, 4, 16, 20),
        (hidden * 8, hidden * 8,  41, 1, 16, 20),
        (hidden * 8, hidden * 8,   5, 1, 1,  2),
        (hidden * 8, 1,            3, 1, 1,  1),
    ]


def _init_conv_layer(key, c_in, c_out, k, groups):
    kw, kb = jax.random.split(key)
    fan_in = (c_in // groups) * k
    w_std = math.sqrt(2.0 / fan_in)              # keeps activations ~unit scale
    w = w_std * jax.random.normal(kw, (c_out, c_in // groups, k), jnp.float32)
    b = 0.01 * jax.random.normal(kb, (c_out,), jnp.float32)
    return {"w": w, "b": b}                      # grouped weight only (no dense)


def init_multi_scale_discriminator(key, hidden):
    cfgs = _disc_s_configs(hidden)
    params = []
    for dk in jax.random.split(key, 3):          # 3 discriminators
        layer_keys = jax.random.split(dk, len(cfgs))
        params.append([
            _init_conv_layer(lk, ci, co, k, grp)
            for lk, (ci, co, k, s, grp, p) in zip(layer_keys, cfgs)
        ])
    return params


def _discriminator_s_forward(layers, cfgs, x, compute_dtype):
    fmap = []
    n = len(layers)
    for i, (lyr, cfg) in enumerate(zip(layers, cfgs)):
        _, _, _, stride, grp, padding = cfg
        slope = None if i == n - 1 else LRELU_SLOPE   # no activation on conv_post
        x = conv1d_pallas(x, lyr["w"], lyr["b"], stride=stride, padding=padding,
                          groups=grp, lrelu_slope=slope,
                          compute_dtype=compute_dtype)
        fmap.append(x)
    return x.reshape(x.shape[0], -1), fmap


def multi_scale_discriminator_forward(params, y, y_hat,
                                      compute_dtype=jnp.bfloat16):
    hidden = params[0][0]["w"].shape[0]
    cfgs = _disc_s_configs(hidden)
    nb = y.shape[0]
    # Run y and y_hat as one concatenated batch: halves the pallas_call count
    # and doubles the parallel batch axis for megacore / v7x sharding.
    x = jnp.concatenate([y, y_hat], axis=0)
    y_d_rs, y_d_gs, fmap_rs, fmap_gs = [], [], [], []
    for i, disc in enumerate(params):
        if i != 0:
            x = avg_pool1d_pallas(x, compute_dtype=compute_dtype)
        score, fmap = _discriminator_s_forward(disc, cfgs, x, compute_dtype)
        y_d_rs.append(score[:nb])
        y_d_gs.append(score[nb:])
        fmap_rs.append([f[:nb] for f in fmap])
        fmap_gs.append([f[nb:] for f in fmap])
    return y_d_rs, y_d_gs, fmap_rs, fmap_gs


# ---------------------------------------------------------------------------
# Pure-JAX reference (independent lax.conv path, grouped weights)
# ---------------------------------------------------------------------------
def _leaky_relu_ref(x):
    return jnp.where(x >= 0.0, x, LRELU_SLOPE * x)


def _conv1d_ref(x, w_grouped, bias, *, stride, padding, groups):
    y = jax.lax.conv_general_dilated(
        x, w_grouped,
        window_strides=(stride,),
        padding=[(padding, padding)],
        dimension_numbers=("NCH", "OIH", "NCH"),
        feature_group_count=groups)
    return y + bias[None, :, None]


def _avg_pool1d_ref(x, kernel_size=4, stride=2, padding=2):
    c = x.shape[1]
    w = jnp.full((c, 1, kernel_size), 1.0 / kernel_size, x.dtype)
    return jax.lax.conv_general_dilated(
        x, w, (stride,), [(padding, padding)],
        dimension_numbers=("NCH", "OIH", "NCH"), feature_group_count=c)


def _discriminator_s_ref(layers, cfgs, x):
    fmap = []
    n = len(layers)
    for i, (lyr, cfg) in enumerate(zip(layers, cfgs)):
        _, _, _, stride, grp, padding = cfg
        x = _conv1d_ref(x, lyr["w"], lyr["b"], stride=stride, padding=padding,
                        groups=grp)
        if i != n - 1:
            x = _leaky_relu_ref(x)
        fmap.append(x)
    return x.reshape(x.shape[0], -1), fmap


def _msd_ref(params, y, y_hat):
    hidden = params[0][0]["w"].shape[0]
    cfgs = _disc_s_configs(hidden)
    y_d_rs, y_d_gs, fmap_rs, fmap_gs = [], [], [], []
    for i, disc in enumerate(params):
        if i != 0:
            y = _avg_pool1d_ref(y)
            y_hat = _avg_pool1d_ref(y_hat)
        y_d_r, fmap_r = _discriminator_s_ref(disc, cfgs, y)
        y_d_g, fmap_g = _discriminator_s_ref(disc, cfgs, y_hat)
        y_d_rs.append(y_d_r)
        fmap_rs.append(fmap_r)
        y_d_gs.append(y_d_g)
        fmap_gs.append(fmap_g)
    return y_d_rs, y_d_gs, fmap_rs, fmap_gs


def _check_close(name, a, r, atol, rtol):
    assert a.shape == r.shape, (name, a.shape, r.shape)
    assert bool(jnp.all(jnp.isfinite(a))), name
    ok = bool(jnp.allclose(a, r, atol=atol, rtol=rtol))
    assert ok, (name, float(jnp.max(jnp.abs(a - r))))


def _conv_unit_test(key, name, *, cin, cout, k, s, g, pad, t,
                    time_tile=None, lrelu=True):
    """Single-layer check against a reference that uses IDENTICALLY bf16-
    quantized operands (f32 accumulation) -> tight 1e-3 tolerance."""
    kx, kw, kb = jax.random.split(key, 3)
    x = jax.random.normal(kx, (2, cin, t), jnp.float32)
    w = 0.3 * jax.random.normal(kw, (cout, cin // g, k), jnp.float32)
    b = 0.1 * jax.random.normal(kb, (cout,), jnp.float32)
    slope = LRELU_SLOPE if lrelu else None
    out = jax.block_until_ready(
        conv1d_pallas(x, w, b, stride=s, padding=pad, groups=g,
                      lrelu_slope=slope, time_tile=time_tile))
    xq = x.astype(jnp.bfloat16).astype(jnp.float32)
    wq = w.astype(jnp.bfloat16).astype(jnp.float32)
    ref = jax.lax.conv_general_dilated(
        xq, wq, (s,), [(pad, pad)],
        dimension_numbers=("NCH", "OIH", "NCH"),
        feature_group_count=g) + b[None, :, None]
    if lrelu:
        ref = _leaky_relu_ref(ref)
    _check_close(name, out, ref, atol=1e-3, rtol=1e-3)


if __name__ == "__main__":
    root = jax.random.PRNGKey(0)
    k_params, k_y, k_yhat, k_t1, k_t2, k_t3 = jax.random.split(root, 6)

    # focused single-conv checks (tight tolerance, identically-quantized ref)
    _conv_unit_test(k_t1, "unit_dense_strided_fold",
                    cin=4, cout=16, k=9, s=2, g=1, pad=4, t=50)
    _conv_unit_test(k_t2, "unit_grouped_chunked",
                    cin=64, cout=256, k=9, s=1, g=8, pad=4, t=40)
    _conv_unit_test(k_t3, "unit_time_tiled_halo",
                    cin=64, cout=32, k=9, s=1, g=1, pad=4, t=300,
                    time_tile=128)

    # full MultiScaleDiscriminator forward (smoke-test shapes)
    batch, t_len, hidden = 2, 128, 32
    params = init_multi_scale_discriminator(k_params, hidden=hidden)
    y = jax.random.normal(k_y, (batch, 1, t_len), jnp.float32)
    y_hat = jax.random.normal(k_yhat, (batch, 1, t_len), jnp.float32)

    fwd = jax.jit(multi_scale_discriminator_forward)
    y_d_rs, y_d_gs, fmap_rs, fmap_gs = jax.block_until_ready(
        fwd(params, y, y_hat))

    # independent pure-f32 JAX reference; tolerance reflects bf16 matmul
    # operands (f32 accumulation) across 8 stacked layers.  The unit tests
    # above verify the kernel itself at 1e-3.
    r_y_d_rs, r_y_d_gs, r_fmap_rs, r_fmap_gs = _msd_ref(params, y, y_hat)

    ATOL = RTOL = 5e-2
    assert len(y_d_rs) == 3 and len(y_d_gs) == 3
    assert len(fmap_rs) == 3 and len(fmap_gs) == 3
    for i in range(3):
        _check_close(f"y_d_r[{i}]", y_d_rs[i], r_y_d_rs[i], ATOL, RTOL)
        _check_close(f"y_d_g[{i}]", y_d_gs[i], r_y_d_gs[i], ATOL, RTOL)
        assert len(fmap_rs[i]) == 8 and len(fmap_gs[i]) == 8
        for j in range(8):
            _check_close(f"fmap_r[{i}][{j}]", fmap_rs[i][j], r_fmap_rs[i][j],
                         ATOL, RTOL)
            _check_close(f"fmap_g[{i}][{j}]", fmap_gs[i][j], r_fmap_gs[i][j],
                         ATOL, RTOL)

    print("KERNEL_OK")
</pallas_src>

<mosaic_0001>
module attributes {stable_mosaic.version = 11 : i64} {
  func.func @_conv_taps_kernel(%arg0: i32, %arg1: i32, %arg2: i32, %arg3: memref<1x1x40x128xbf16, #tpu.memory_space<vmem>>, %arg4: memref<1x1x16x40xbf16, #tpu.memory_space<vmem>>, %arg5: memref<16x1xf32, #tpu.memory_space<vmem>>, %arg6: memref<1x16x128xf32, #tpu.memory_space<vmem>>) attributes {dimension_semantics = [#tpu.dimension_semantics<parallel>, #tpu.dimension_semantics<parallel>, #tpu.dimension_semantics<parallel>], iteration_bounds = array<i64: 1, 2, 1>, scalar_prefetch = 0 : i64, scratch_operands = 0 : i64, tpu.core_type = #tpu.core_type<tc>, window_params = [{transform_indices = @transform_0, window_bounds = array<i64: 1, 1, 40, 128>}, {transform_indices = @transform_1, window_bounds = array<i64: 1, 1, 16, 40>}, {transform_indices = @transform_2, window_bounds = array<i64: 16, 1>}, {transform_indices = @transform_3, window_bounds = array<i64: 1, 16, 128>}]} {
    %cst = arith.constant 0.000000e+00 : f32
    %0 = vector.broadcast %cst : f32 to vector<16x128xf32>
    %c0 = arith.constant 0 : index
    %c0_0 = arith.constant 0 : index
    %c0_1 = arith.constant 0 : index
    %c0_2 = arith.constant 0 : index
    %1 = vector.load %arg3[%c0, %c0_0, %c0_1, %c0_2] : memref<1x1x40x128xbf16, #tpu.memory_space<vmem>>, vector<1x1x40x128xbf16>
    %2 = vector.shape_cast %1 : vector<1x1x40x128xbf16> to vector<40x128xbf16>
    %c0_3 = arith.constant 0 : index
    %c0_4 = arith.constant 0 : index
    %c0_5 = arith.constant 0 : index
    %c0_6 = arith.constant 0 : index
    %3 = vector.load %arg4[%c0_3, %c0_4, %c0_5, %c0_6] : memref<1x1x16x40xbf16, #tpu.memory_space<vmem>>, vector<1x1x16x40xbf16>
    %4 = vector.shape_cast %3 : vector<1x1x16x40xbf16> to vector<16x40xbf16>
    %cst_7 = arith.constant dense<0.000000e+00> : vector<16x128xf32>
    %5 = tpu.matmul %4, %2, %cst_7 {dimension_numbers = #tpu.dot_dimension_numbers<[1], [0], [0], [1], [0, 0, 1, 1], [], []>} : vector<16x40xbf16>, vector<40x128xbf16>, vector<16x128xf32> -> vector<16x128xf32>
    %6 = arith.addf %0, %5 : vector<16x128xf32>
    %c0_8 = arith.constant 0 : index
    %c0_9 = arith.constant 0 : index
    %7 = vector.load %arg5[%c0_8, %c0_9] : memref<16x1xf32, #tpu.memory_space<vmem>>, vector<16x1xf32>
    %8 = vector.broadcast %7 : vector<16x1xf32> to vector<16x128xf32>
    %9 = arith.addf %6, %8 : vector<16x128xf32>
    %cst_10 = arith.constant 0.000000e+00 : f32
    %10 = vector.broadcast %cst_10 : f32 to vector<16x128xf32>
    %11 = arith.cmpf oge, %9, %10 : vector<16x128xf32>
    %cst_11 = arith.constant 1.000000e-01 : f32
    %12 = vector.broadcast %cst_11 : f32 to vector<16x128xf32>
    %13 = arith.mulf %12, %9 : vector<16x128xf32>
    %14 = arith.select %11, %9, %13 : vector<16x128xi1>, vector<16x128xf32>
    %c0_12 = arith.constant 0 : index
    %c0_13 = arith.constant 0 : index
    %c0_14 = arith.constant 0 : index
    %15 = vector.load %arg6[%c0_12, %c0_13, %c0_14] : memref<1x16x128xf32, #tpu.memory_space<vmem>>, vector<1x16x128xf32>
    %16 = vector.shape_cast %15 : vector<1x16x128xf32> to vector<16x128xf32>
    %17 = vector.shape_cast %14 : vector<16x128xf32> to vector<1x16x128xf32>
    tpu.vector_store %arg6[%c0_12, %c0_13, %c0_14], %17 {strides = array<i32>} : memref<1x16x128xf32, #tpu.memory_space<vmem>>, vector<1x16x128xf32>,
    return
  }
  func.func @transform_0(%arg0: i32, %arg1: i32, %arg2: i32) -> (i32, i32, i32, i32) {
    %c0_i32 = arith.constant 0 : i32
    %c0_i32_0 = arith.constant 0 : i32
    return %arg1, %arg2, %arg0, %c0_i32 : i32, i32, i32, i32
  }
  func.func @transform_1(%arg0: i32, %arg1: i32, %arg2: i32) -> (i32, i32, i32, i32) {
    %c0_i32 = arith.constant 0 : i32
    %c0_i32_0 = arith.constant 0 : i32
    %c0_i32_1 = arith.constant 0 : i32
    %c0_i32_2 = arith.constant 0 : i32
    return %arg0, %c0_i32, %c0_i32_0, %c0_i32_1 : i32, i32, i32, i32
  }
  func.func @transform_2(%arg0: i32, %arg1: i32, %arg2: i32) -> (i32, i32) {
    %c0_i32 = arith.constant 0 : i32
    %c0_i32_0 = arith.constant 0 : i32
    return %arg0, %c0_i32 : i32, i32
  }
  func.func @transform_3(%arg0: i32, %arg1: i32, %arg2: i32) -> (i32, i32, i32) {
    %c0_i32 = arith.constant 0 : i32
    return %arg1, %arg0, %arg2 : i32, i32, i32
  }
}

</mosaic_0001>

<bundles_post_ra>
// kernel: tpu_custom_call.1
= control target key start
LH: loop header
LB: loop body
LE: loop exit
PB: predicated region body
PF: predicated region fallthrough
CT: control target
= control target key end

     0   :  { %8 = vsyncpa [#allocation3], 0  ;;  %s940_s0 = inlined_call_operand.hbm [shape: bf16[2,1,40,128], index: 0, kind: input, shape index: {}]   ;;  %s941_s1 = inlined_call_operand.vmem [shape: bf16[1,1,16,40], index: 1, kind: input, shape index: {}]   ;;  %s942_s2 = inlined_call_operand.vmem [shape: f32[16,1], index: 2, kind: input, shape index: {}]   ;;  %s943_s3 = inlined_call_operand.hbm [shape: f32[2,16,128], index: 3, kind: output, shape index: {}]  }
   0x1   :  { %10 = vsyncpa [#allocation3 + $0x1], 0 }
   0x2   :  { %11 = vsyncpa [#allocation4], 0 }
   0x3   :  { %13 = vsyncpa [#allocation4 + $0x1], 0  ;;  %s755_s12 = smov 0   ;;  %s757_s13 = smov 0  }
   0x4   :  { %s759_s14 = smov 0   ;;  %s761_s15 = smov 0  }
   0x5   :  { %s763_s16 = smov 0   ;;  %s765_s17 = smov 0  }
   0x6 LB: > { %s501_s18 = sadd.s32 4294967295, %s724_s17   ;;  %s502_s19 = sadd.s32 4294967294, %s724_s17   ;;  %s724_s17 = sphi %s765_s17, %s19_s17   ;;  %s720_s16 = sphi %s763_s16, %s958_s16   ;;  %s716_s15 = sphi %s761_s15, %s957_s15   ;;  %s712_s14 = sphi %s759_s14, %s956_s14   ;;  %s708_s13 = sphi %s757_s13, %s955_s13   ;;  %s704_s12 = sphi %s755_s12, %s954_s12  }
   0x7   : > { %s34_s20 = sadd.s32 1, %s720_s16  ;;  %s49_s21 = sadd.s32 1, %s712_s14 }
   0x8   : > { %p36_p0 = scmp.ge.s32.totalorder %s34_s20, 2  ;;  %p56_p1 = scmp.ne.s32.totalorder %s712_s14, %s708_s13 }
   0x9   : > { %p57_p2 = scmp.eq.s32.totalorder %s724_s17, 0  ;;  %p62_p3 = scmp.ne.s32.totalorder %s708_s13, %s704_s12 }
   0xa   : > { %s960_s20 = smov (%p36_p0, %s34_s20), 0  ;;  %p63_p5 = scmp.eq.s32.totalorder %s501_s18, 0 }
   0xb   : > { %p796_p4 = por %p57_p2, %p56_p1  ;;  %s42_s23 = ssub.s32 %s720_s16, %s960_s20 }
   0xc   : > { %p142_p6 = scmp.eq.s32.totalorder %s501_s18, 1  ;;  %p47_p7 = scmp.eq.s32.totalorder %s42_s23, 0 }
   0xd   : > { %p802_p8 = por %p63_p5, %p62_p3  ;;  %p148_p10 = scmp.eq.s32.totalorder %s502_s19, 1 }
   0xe   : > { %p806_p9 = por %p142_p6, %p56_p1  ;;  %p550_p13 = scmp.lt.s32.totalorder %s724_s17, 2 }
   0xf   : > { %s811_s26 = scalar_select %p47_p7, %s712_s14, %s49_s21  }
  0x10   : > { %s947_s25 = scalar_select %p806_p9, 1, 0 }
  0x11   : > { %p813_p11 = por %p148_p10, %p62_p3  ;;  %s185_s28 = sand.u32 1, %s712_s14  }
  0x12   : > { %s535_s29 = smul.u32 20, %s185_s28  ;;  %p823_p0 = pnand %p550_p13, %p796_p4 }
  0x13   : > { %s948_s27 = scalar_select %p813_p11, 1, 0 }
  0x14   : > { %s536_s30 = smul.u32 320, %s720_s16  ;;  %s189_s8 = scalar_lea.vmem [#allocation2], %s535_s29 }
  0x15   : > { %s200_s9 = sshll.u32 %s189_s8, 4  ;;  %s835_s10 = scalar_lea.sflag [#allocation3], %s185_s28  ;;  %s832_s9 = int_to_ptr.vmem [resolvable:$true] %s200_s9 }
  0x16   : > { %s830_s7 = scalar_lea.hbm %s940_s0, %s536_s30  ;;  %p614_p3 = pneg %p823_p0 }
  0x17   : > { %s612_s11 = scalar_lea.hbm %s830_s7, 320  ;;  %s617_s21 = scalar_lea.hbm %s940_s0, 640 }
  0x18   : > { %p613_p2 = scmp.ne.s32.totalorder %s830_s7, %s612_s11  ;;  %p618_p6 = scmp.lt.u32.totalorder %s830_s7, %s940_s0 }
  0x19   : > { %p619_p7 = scmp.lt.u32.totalorder %s617_s21, %s612_s11  ;;  %p621_p13 = scmp.lt.u32.totalorder %s612_s11, %s830_s7 }
  0x1a   : > { %p615_p4 = pnand %p614_p3, %p613_p2 }
  0x1b   : > { %p620_p10 = por %p619_p7, %p618_p6 }
  0x1c   : > { %p616_p5 = pneg %p615_p4 }
  0x1d   : > { %p622_p12 = por %p621_p13, %p620_p10 }
  0x1f   : > { %p623_p1 = pnand %p622_p12, %p616_p5 }
  0x21   : > { %626 = shalt.err (!%p623_p1)
}
  0x22   : > { %s627_s28 = scalar_lea.vmem %s832_s9, 320  ;;  %s726_s29 = smov [#allocation2]  }
  0x23   : > { %p628_p2 = scmp.ne.s32.totalorder %s832_s9, %s627_s28  ;;  %s632_s30 = sshll.u32 %s726_s29, 4  ;;  %s633_s30 = int_to_ptr.vmem [resolvable:$false] %s632_s30 }
  0x24   : > { %s634_s5 = scalar_lea.vmem %s633_s30, 640  ;;  %p635_p9 = scmp.lt.s32.totalorder %s832_s9, %s633_s30 }
  0x25   : > { %p630_p4 = pnand %p628_p2, %p614_p3  ;;  %p636_p6 = scmp.lt.s32.totalorder %s634_s5, %s627_s28 }
  0x27   : > { %p631_p11 = pneg %p630_p4  ;;  %p637_p7 = por %p636_p6, %p635_p9 }
  0x29   : > { %p638_p10 = pnand %p637_p7, %p631_p11 }
  0x2b   : > { %641 = shalt.err (!%p638_p10)
}
  0x2c   : > { %s727_s6 = smov 64   ;;  %s728_s8 = smov 4  }
  0x2d   : > { %545 = dma.hbm_to_vmem [thread:$0]  (!%p823_p0), %s830_s7, 320, %s832_s9, %s835_s10, %s727_s6, %s727_s6, %s728_s8  }
  0x2e   : > { %p208_p12 = scmp.lt.s32.totalorder %s724_s17, 3  ;;  %p950_p1 = scmp.ge.s32.totalorder %s724_s17, 1 }
  0x30   : > { %p209_p3 = pnand %p950_p1, %p208_p12 }
  0x31   : > { %s867_s11 = sand.u32 (!%p209_p3), 1, %s708_s13  }
  0x32   : > { %212 = sbr.rel (%p209_p3) target bundleno = 305 (0x131), region = 32  ;;  %s215_s19 = scalar_lea.sflag (!%p209_p3), [#allocation3], %s867_s11 }
  0x33   : > { %s537_s18 = smul.u32 (!%p209_p3), 20, %s867_s11 }
  0x35   : > { %s218_s21 = scalar_lea.vmem (!%p209_p3), [#allocation2], %s537_s18 }
  0x39   : > { %695 = dma.done.wait (%p802_p8), %s215_s19, 320  }
  0x3a   : > { %697 = vsyncadd (%p802_p8), %s215_s19, 4294966976  ;;  %v729_v0 = vmov 0.0   ;;  %vm730_vm0 = vmmov 0   ;;  %v731_v1 = vmov 0   ;;  %v608_v2 = vld [vmem:[%s218_s21] sm:$0xff]   ;;  %v609_v3 = vld [vmem:[%s218_s21 + $0x8] sm:$0xff]  }
  0x3b   : > { %525 = vmatprep.subr.bf16.mxu0 %v729_v0  ;;  %531 = vmatprep.mubr.msk.bf16.mxu0 %vm730_vm0, %v729_v0  ;;  %v610_v4 = vld [vmem:[%s218_s21 + $0x10] ss:$0 sps:$4 sm:$0xff]   ;;  %vm308_vm1 = vcmask 1043456   ;;  %v273_v6 = vld [vmem:[%s942_s2 + $0x8] sm:$0xff]  ;;  %vm304_vm2 = vcmask 326656   ;;  %s509_s23 = sshll.u32 %s867_s11, 4 }
  0x3c   : > { %607 = vset.pattern.permute.xlu0 %v731_v1  ;;  %526 = vmatpush3.bf16.msra.mxu0 %v608_v2  ;;  %v272_v5 = vld [vmem:[%s942_s2] sm:$0xff]  ;;  %v310_v7 = vsel %vm308_vm1, %v610_v4, 0  ;;  %s250_s28 = scalar_lea.vmem [#allocation5], %s509_s23  ;;  %s520_s30 = sshll.u32 %s716_s15, 8 }
  0x3d   : > { %527 = vmatprep.subr.bf16.mxu0 %v729_v0  ;;  %276 = vperm.xlu0 %607, %v272_v5   ;;  %v611_v8 = vld [vmem:[%s941_s1] sm:$0xff]   ;;  %s378_s29 = sshll.u32 %s250_s28, 4  ;;  %s891_s8 = scalar_lea.hbm %s943_s3, %s520_s30  ;;  %s886_s29 = int_to_ptr.vmem [resolvable:$true] %s378_s29 }
  0x3e   : > { %s362_s15 = scalar_lea.sflag [#allocation4], %s867_s11  ;;  %s642_s18 = scalar_lea.vmem %s886_s29, 256 }
  0x3f   : > { %p643_p8 = scmp.ne.s32.totalorder %s886_s29, %s642_s18  ;;  %p951_p9 = scmp.ne.s32.totalorder %s947_s25, 0 }
  0x40   : > { %528 = vmatpush3.bf16.msra.mxu0 %v609_v3  ;;  %s732_s19 = smov [#allocation5]  }
  0x41   : > { %529 = vmatprep.subr.bf16.mxu0 %v729_v0  ;;  %281 = vperm.xlu0 %607, %v273_v6   ;;  %p644_p11 = pnand %p643_p8, %p951_p9  ;;  %s646_s21 = sshll.u32 %s732_s19, 4  ;;  %s647_s21 = int_to_ptr.vmem [resolvable:$false] %s646_s21 }
  0x42   : > { %s648_s4 = scalar_lea.vmem %s647_s21, 512  ;;  %p649_p5 = scmp.lt.s32.totalorder %s886_s29, %s647_s21 }
  0x43   : > { %p645_p0 = pneg %p644_p11  ;;  %p650_p13 = scmp.lt.s32.totalorder %s648_s4, %s642_s18 }
  0x44   : > { %530 = vmatpush3.bf16.msra.mxu0 %v310_v7 }
  0x45   : > { %p651_p2 = por %p650_p13, %p649_p5 }
  0x47   : > { %532 = vmatmul.mubr.msk.bf16.vlgmr.msra.gmra.mrb[0].mxu0 %vm304_vm2, %v611_v8  ;;  %p652_p4 = pnand %p651_p2, %p645_p0 }
  0xbc   : > { %v277_v9 = vpop.permute.xlu0 %276 }
  0xc0   : > { %v282_v13 = vpop.permute.xlu0 %281 }
 0x11a   : > { %v346_v10 = vpop.f32.mrb[0].mxu0 }
 0x11b   : > { %v347_v11 = vadd.f32 %v346_v10, %v277_v9  ;;  %v533_v12 = vpop.f32.mrb[1].mxu0 }
 0x11c   : > { %v349_v14 = vpop.f32.mrb[2].mxu0 }
 0x11d   : > { %vm353_vm3 = vcmp.ge.f32.partialorder %v347_v11, 0.0  ;;  %v355_v15 = vmul.f32 0.1, %v347_v11  ;;  %v350_v16 = vadd.f32 %v349_v14, %v282_v13  ;;  %v534_v17 = vpop.f32.mrb[3].mxu0 }
 0x11f   : > { %v357_v18 = vsel %vm353_vm3, %v347_v11, %v355_v15  ;;  %vm354_vm4 = vcmp.ge.f32.partialorder %v350_v16, 0.0  ;;  %v356_v19 = vmul.f32 0.1, %v350_v16 }
 0x120   : > { %359 = vst [vmem:[%s250_s28] sm:$0xff] %v357_v18 }
 0x121   : > { %v358_v20 = vsel %vm354_vm4, %v350_v16, %v356_v19 }
 0x122   : > { %360 = vst [vmem:[%s250_s28 + $0x8] sm:$0xff] %v358_v20 }
 0x123   : > { %655 = shalt.err (!%p652_p4)
}
 0x124   : > { %s656_s7 = scalar_lea.hbm %s891_s8, 256  ;;  %s660_s10 = scalar_lea.hbm %s943_s3, 512 }
 0x125   : > { %p657_p6 = scmp.ne.s32.totalorder %s891_s8, %s656_s7  ;;  %p661_p12 = scmp.lt.u32.totalorder %s891_s8, %s943_s3 }
 0x126   : > { %p662_p1 = scmp.lt.u32.totalorder %s660_s10, %s656_s7  ;;  %p664_p8 = scmp.lt.u32.totalorder %s656_s7, %s891_s8 }
 0x127   : > { %p658_p7 = pnand %p657_p6, %p951_p9 }
 0x128   : > { %p663_p3 = por %p662_p1, %p661_p12 }
 0x129   : > { %p659_p10 = pneg %p658_p7 }
 0x12a   : > { %p665_p11 = por %p664_p8, %p663_p3 }
 0x12c   : > { %p666_p0 = pnand %p665_p11, %p659_p10 }
 0x12e   : > { %669 = shalt.err (!%p666_p0)
}
 0x12f   : > { %s733_s28 = smov 128   ;;  %s734_s30 = smov 8  }
 0x130   : > { %540 = dma.vmem_to_hbm [thread:$0]  (%p951_p9), %s886_s29, 256, %s891_s8, %s362_s15, %s733_s28, %s733_s28, %s734_s30  }
 0x131 PF: > { %s393_s5 = sand.u32 1, %s704_s12   ;;  %p952_p5 = scmp.ne.s32.totalorder %s948_s27, 0 }
 0x132   : > { %p953_p13 = scmp.ge.s32.totalorder %s724_s17, 2  ;;  %s394_s6 = scalar_lea.sflag [#allocation4], %s393_s5 }
 0x134   : > { %p547_p2 = pnand %p953_p13, %p952_p5 }
 0x136   : > { %699 = dma.done.wait (!%p547_p2), %s394_s6, 256  }
 0x137   : > { %701 = vsyncadd (!%p547_p2), %s394_s6, 4294967040  ;;  %s19_s17 = sadd.s32 1, %s724_s17   ;;  %s954_s12 = smov %s708_s13 }
 0x138   : > { %p16_p4 = scmp.ge.s32.totalorder %s19_s17, 4   ;;  %s955_s13 = smov %s712_s14 }
 0x139   : > { %s956_s14 = smov %s811_s26  ;;  %s957_s15 = smov %s720_s16 }
 0x13a   : > { %s958_s16 = smov %s960_s20  ;;  %18 = sbr.rel (!%p16_p4) target bundleno = 6 (0x6), region = 83 }
 0x141   :  { %399 = vsyncpa [#allocation3], 1 }
 0x142   :  { %401 = vsyncpa [#allocation3 + $0x1], 1 }
 0x143   :  { %402 = vsyncpa [#allocation4], 1 }
 0x144   :  { %404 = vsyncpa [#allocation4 + $0x1], 1 }

</bundles_post_ra>
